<compile_context>
chip_gen: v6e
topology: v6e:2x2x1
jax: 0.10.0
libtpu: 0.0.40
codegen_flags: <defaults>
</compile_context>

<pallas_src>
import functools

import jax
import jax.numpy as jnp
from jax.experimental import pallas as pl
from jax.experimental.pallas import tpu as pltpu


_VMEM = pltpu.MemorySpace.VMEM


# ---------------------------------------------------------------------------
# Pallas kernels
# ---------------------------------------------------------------------------
def _conv_mm_kernel(p_ref, w_ref, b_ref, o_ref):
    # p: (K_pad, M)  transposed im2col patches, M = B*Ho*Wo (lane-dense)
    # w: (O, K_pad)  flattened conv weight, zero-padded along K
    # b: (O, 1)      bias column (broadcast along lanes)
    acc = jnp.dot(w_ref[...], p_ref[...], preferred_element_type=jnp.float32)
    acc = acc + b_ref[...]
    o_ref[...] = jnp.maximum(acc, 0.0).astype(o_ref.dtype)   # fused ReLU


def pallas_conv_mm(patches_t, w_flat, b_col):
    O = w_flat.shape[0]
    M = patches_t.shape[1]
    return pl.pallas_call(
        _conv_mm_kernel,
        out_shape=jax.ShapeDtypeStruct((O, M), jnp.float32),
        in_specs=[pl.BlockSpec(memory_space=_VMEM)] * 3,
        out_specs=pl.BlockSpec(memory_space=_VMEM),
    )(patches_t, w_flat, b_col)


def _head_kernel(h_ref, w1_ref, b1_ref, w2_ref, b2_ref, wd_ref, e_ref, p_ref,
                 dist_ref, ypred_ref):
    # Fused: fc1 -> ReLU -> fc2 -> ReLU -> last_layer -> output_layer.
    h1 = jnp.dot(h_ref[...], w1_ref[...], preferred_element_type=jnp.float32)
    h1 = jnp.maximum(h1 + b1_ref[...], 0.0)
    h2 = jnp.dot(h1, w2_ref[...], preferred_element_type=jnp.float32)
    h2 = jnp.maximum(h2 + b2_ref[...], 0.0)
    # Dropout(p=0.2): identity at inference time.
    z = jnp.dot(h2, wd_ref[...], preferred_element_type=jnp.float32)   # (B, E*C)
    diff = z - e_ref[...]
    d2 = diff * diff
    dist = jnp.dot(d2, p_ref[...], preferred_element_type=jnp.float32)  # (B, C)
    dist_ref[...] = dist
    ypred_ref[...] = jnp.exp(-dist)


def pallas_head(h, fc1_wt, fc1_b, fc2_wt, fc2_b, duq_wt, e_flat, pool):
    B = h.shape[0]
    C = pool.shape[1]
    return pl.pallas_call(
        _head_kernel,
        out_shape=(
            jax.ShapeDtypeStruct((B, C), jnp.float32),   # distances
            jax.ShapeDtypeStruct((B, C), jnp.float32),   # exp(-distances)
        ),
        in_specs=[pl.BlockSpec(memory_space=_VMEM)] * 8,
        out_specs=(pl.BlockSpec(memory_space=_VMEM),
                   pl.BlockSpec(memory_space=_VMEM)),
    )(h, fc1_wt, fc1_b, fc2_wt, fc2_b, duq_wt, e_flat, pool)


# ---------------------------------------------------------------------------
# Jitted XLA glue (im2col, max-pool)
# ---------------------------------------------------------------------------
def _round_up(n, m):
    return ((n + m - 1) // m) * m


# TODO(synk): im2col patch extraction (25 strided 5x5 windows) stays in jitted
# XLA glue; an in-kernel version needs relayout-heavy reshapes of strided
# windows, and the ~0.2 MB HBM round trip it saves is negligible under jit.
def im2col_t(x, k, k_pad):
    """NCHW -> transposed patch matrix (k_pad, B*Ho*Wo).

    Row index = c*k*k + ki*k + kj (matches PyTorch Conv2d weight flattening);
    column index = b*Ho*Wo + ho*Wo + wo.  Zero-padded along rows to k_pad.
    """
    B, Cin, H, W = x.shape
    Ho, Wo = H - k + 1, W - k + 1
    cols = []
    for ki in range(k):
        for kj in range(k):
            cols.append(x[:, :, ki:ki + Ho, kj:kj + Wo])     # (B, Cin, Ho, Wo)
    p = jnp.stack(cols, axis=0)                              # (k*k, B, Cin, Ho, Wo)
    p = jnp.transpose(p, (2, 0, 1, 3, 4))                    # (Cin, k*k, B, Ho, Wo)
    p = p.reshape(Cin * k * k, B * Ho * Wo)
    if k_pad > Cin * k * k:
        p = jnp.pad(p, ((0, k_pad - Cin * k * k), (0, 0)))
    return p, Ho, Wo


def maxpool2x2_obhw(x):
    # x: (O, B, H, W) -> (O, B, H/2, W/2).  The ReLU that follows the pool in
    # PyTorch is already fused into the preceding conv kernel (ReLU commutes
    # with max), so only the pool remains here.
    O, B, H, W = x.shape
    return x.reshape(O, B, H // 2, 2, W // 2, 2).max(axis=(3, 5))


# ---------------------------------------------------------------------------
# Parameters
# ---------------------------------------------------------------------------
def init_params(key, num_classes, embedding_size):
    ks = jax.random.split(key, 8)
    p = {}
    p["conv1_w"] = 0.05 * jax.random.normal(ks[0], (6, 1, 5, 5), jnp.float32)
    p["conv1_b"] = 0.05 * jax.random.normal(ks[1], (6,), jnp.float32)
    p["conv2_w"] = 0.05 * jax.random.normal(ks[2], (16, 6, 5, 5), jnp.float32)
    p["conv2_b"] = 0.05 * jax.random.normal(ks[3], (16,), jnp.float32)
    p["fc1_w"] = 0.05 * jax.random.normal(ks[4], (120, 256), jnp.float32)
    p["fc1_b"] = jnp.zeros((120,), jnp.float32)
    p["fc2_w"] = 0.05 * jax.random.normal(ks[5], (84, 120), jnp.float32)
    p["fc2_b"] = jnp.zeros((84,), jnp.float32)
    # DUQ parameters / buffers (matching CNN_DUQ.__init__)
    p["W"] = 0.05 * jax.random.normal(
        ks[6], (embedding_size, num_classes, 84), jnp.float32)
    N = jnp.ones((num_classes,), jnp.float32) * 12.0
    m = jax.random.normal(ks[7], (embedding_size, num_classes), jnp.float32)
    p["N"] = N
    p["m"] = m * N[None, :]
    return p


def prepare_params(p, sigma):
    """One-time derivation of all kernel-side tensors (hoisted out of forward)."""
    prep = {}
    # Conv weights: (O, Cin, k, k) -> (O, Cin*k*k), zero-padded to a multiple
    # of 8 along the contraction dim; biases as (O, 1) columns.
    for name, w, b in (("conv1", p["conv1_w"], p["conv1_b"]),
                       ("conv2", p["conv2_w"], p["conv2_b"])):
        O, Cin, k, _ = w.shape
        K = Cin * k * k
        K_pad = _round_up(K, 8)
        wf = jnp.pad(w.reshape(O, K), ((0, 0), (0, K_pad - K)))
        prep[name + "_wf"] = wf
        prep[name + "_b"] = b.reshape(O, 1)
    # fc weights transposed for x @ W^T; biases as (1, N) rows.
    prep["fc1_wt"] = p["fc1_w"].T
    prep["fc1_b"] = p["fc1_b"].reshape(1, -1)
    prep["fc2_wt"] = p["fc2_w"].T
    prep["fc2_b"] = p["fc2_b"].reshape(1, -1)
    # DUQ head: W (E, C, F) -> (F, E*C) with q = m*C + n flattening;
    # class embeddings m/N -> (1, E*C);
    # pooling matrix implements mean over E and the 1/(2*sigma^2) division:
    #   pool[q, n] = 1/(2*E*sigma^2) if q % C == n else 0.
    E, C, F = p["W"].shape
    prep["duq_wt"] = p["W"].reshape(E * C, F).T
    prep["e_flat"] = (p["m"] / p["N"][None, :]).reshape(1, E * C)
    scale = 1.0 / (2.0 * E * float(sigma) ** 2)
    prep["pool"] = (jnp.arange(E * C)[:, None] % C == jnp.arange(C)[None, :]
                    ).astype(jnp.float32) * scale
    return prep


# ---------------------------------------------------------------------------
# Forward (jitted end-to-end)
# ---------------------------------------------------------------------------
@jax.jit
def cnn_duq_forward(prep, x):
    B = x.shape[0]
    k = 5

    # ---- LeNet.project: conv1 -> pool -> relu -> conv2 -> pool -> relu -----
    p1, Ho1, Wo1 = im2col_t(x, k, prep["conv1_wf"].shape[1])       # (32, B*576)
    c1 = pallas_conv_mm(p1, prep["conv1_wf"], prep["conv1_b"])     # (6, B*576)
    O1 = prep["conv1_wf"].shape[0]
    h = maxpool2x2_obhw(c1.reshape(O1, B, Ho1, Wo1))               # (6, B, 12, 12)
    h = jnp.transpose(h, (1, 0, 2, 3))                             # (B, 6, 12, 12)

    p2, Ho2, Wo2 = im2col_t(h, k, prep["conv2_wf"].shape[1])       # (152, B*64)
    c2 = pallas_conv_mm(p2, prep["conv2_wf"], prep["conv2_b"])     # (16, B*64)
    O2 = prep["conv2_wf"].shape[0]
    h = maxpool2x2_obhw(c2.reshape(O2, B, Ho2, Wo2))               # (16, B, 4, 4)
    h = jnp.transpose(h, (1, 0, 2, 3)).reshape(B, -1)              # (B, 256) NCHW flatten

    # ---- fc1 + fc2 + DUQ last_layer/output_layer: single fused kernel ------
    dists, y_pred = pallas_head(
        h, prep["fc1_wt"], prep["fc1_b"], prep["fc2_wt"], prep["fc2_b"],
        prep["duq_wt"], prep["e_flat"], prep["pool"])
    return y_pred, dists     # matches CNN_DUQ.forward() return order


if __name__ == "__main__":
    key = jax.random.PRNGKey(0)
    pkey, xkey = jax.random.split(key)

    num_classes = 10
    embedding_size = 32
    length_scale = 0.1          # sigma (learnable_length_scale=False)
    # gamma only affects update_embeddings(), not forward().

    params = init_params(pkey, num_classes, embedding_size)
    prep = prepare_params(params, length_scale)
    x = jax.random.normal(xkey, (2, 1, 28, 28), jnp.float32)   # MNIST-shaped input

    y_pred, dists = cnn_duq_forward(prep, x)
    jax.block_until_ready((y_pred, dists))

    assert y_pred.shape == (2, num_classes)
    assert dists.shape == (2, num_classes)
    assert bool(jnp.all(jnp.isfinite(y_pred))) and bool(jnp.all(jnp.isfinite(dists)))
    print("KERNEL_OK")
</pallas_src>

<mosaic_0001>
module attributes {stable_mosaic.version = 11 : i64} {
  func.func @_conv_mm_kernel(%arg0: memref<32x1152xf32, #tpu.memory_space<vmem>>, %arg1: memref<6x32xf32, #tpu.memory_space<vmem>>, %arg2: memref<6x1xf32, #tpu.memory_space<vmem>>, %arg3: memref<6x1152xf32, #tpu.memory_space<vmem>>) attributes {dimension_semantics = [], scalar_prefetch = 0 : i64, scratch_operands = 0 : i64, tpu.core_type = #tpu.core_type<tc>} {
    %c0 = arith.constant 0 : index
    %c0_0 = arith.constant 0 : index
    %0 = vector.load %arg1[%c0, %c0_0] : memref<6x32xf32, #tpu.memory_space<vmem>>, vector<6x32xf32>
    %c0_1 = arith.constant 0 : index
    %c0_2 = arith.constant 0 : index
    %1 = vector.load %arg0[%c0_1, %c0_2] : memref<32x1152xf32, #tpu.memory_space<vmem>>, vector<32x1152xf32>
    %cst = arith.constant dense<0.000000e+00> : vector<6x1152xf32>
    %2 = tpu.matmul %0, %1, %cst {dimension_numbers = #tpu.dot_dimension_numbers<[1], [0], [0], [1], [0, 0, 1, 1], [], []>} : vector<6x32xf32>, vector<32x1152xf32>, vector<6x1152xf32> -> vector<6x1152xf32>
    %c0_3 = arith.constant 0 : index
    %c0_4 = arith.constant 0 : index
    %3 = vector.load %arg2[%c0_3, %c0_4] : memref<6x1xf32, #tpu.memory_space<vmem>>, vector<6x1xf32>
    %4 = vector.broadcast %3 : vector<6x1xf32> to vector<6x1152xf32>
    %5 = arith.addf %2, %4 : vector<6x1152xf32>
    %cst_5 = arith.constant 0.000000e+00 : f32
    %6 = vector.broadcast %cst_5 : f32 to vector<6x1152xf32>
    %7 = arith.maximumf %5, %6 : vector<6x1152xf32>
    %c0_6 = arith.constant 0 : index
    %c0_7 = arith.constant 0 : index
    %8 = vector.load %arg3[%c0_6, %c0_7] : memref<6x1152xf32, #tpu.memory_space<vmem>>, vector<6x1152xf32>
    tpu.vector_store %arg3[%c0_6, %c0_7], %7 {strides = array<i32>} : memref<6x1152xf32, #tpu.memory_space<vmem>>, vector<6x1152xf32>,
    return
  }
}

module attributes {stable_mosaic.version = 11 : i64} {
  func.func @_conv_mm_kernel(%arg0: memref<152x128xf32, #tpu.memory_space<vmem>>, %arg1: memref<16x152xf32, #tpu.memory_space<vmem>>, %arg2: memref<16x1xf32, #tpu.memory_space<vmem>>, %arg3: memref<16x128xf32, #tpu.memory_space<vmem>>) attributes {dimension_semantics = [], scalar_prefetch = 0 : i64, scratch_operands = 0 : i64, tpu.core_type = #tpu.core_type<tc>} {
    %c0 = arith.constant 0 : index
    %c0_0 = arith.constant 0 : index
    %0 = vector.load %arg1[%c0, %c0_0] : memref<16x152xf32, #tpu.memory_space<vmem>>, vector<16x152xf32>
    %c0_1 = arith.constant 0 : index
    %c0_2 = arith.constant 0 : index
    %1 = vector.load %arg0[%c0_1, %c0_2] : memref<152x128xf32, #tpu.memory_space<vmem>>, vector<152x128xf32>
    %cst = arith.constant dense<0.000000e+00> : vector<16x128xf32>
    %2 = tpu.matmul %0, %1, %cst {dimension_numbers = #tpu.dot_dimension_numbers<[1], [0], [0], [1], [0, 0, 1, 1], [], []>} : vector<16x152xf32>, vector<152x128xf32>, vector<16x128xf32> -> vector<16x128xf32>
    %c0_3 = arith.constant 0 : index
    %c0_4 = arith.constant 0 : index
    %3 = vector.load %arg2[%c0_3, %c0_4] : memref<16x1xf32, #tpu.memory_space<vmem>>, vector<16x1xf32>
    %4 = vector.broadcast %3 : vector<16x1xf32> to vector<16x128xf32>
    %5 = arith.addf %2, %4 : vector<16x128xf32>
    %cst_5 = arith.constant 0.000000e+00 : f32
    %6 = vector.broadcast %cst_5 : f32 to vector<16x128xf32>
    %7 = arith.maximumf %5, %6 : vector<16x128xf32>
    %c0_6 = arith.constant 0 : index
    %c0_7 = arith.constant 0 : index
    %8 = vector.load %arg3[%c0_6, %c0_7] : memref<16x128xf32, #tpu.memory_space<vmem>>, vector<16x128xf32>
    tpu.vector_store %arg3[%c0_6, %c0_7], %7 {strides = array<i32>} : memref<16x128xf32, #tpu.memory_space<vmem>>, vector<16x128xf32>,
    return
  }
}

module attributes {stable_mosaic.version = 11 : i64} {
  func.func @_head_kernel(%arg0: memref<2x256xf32, #tpu.memory_space<vmem>>, %arg1: memref<256x120xf32, #tpu.memory_space<vmem>>, %arg2: memref<1x120xf32, #tpu.memory_space<vmem>>, %arg3: memref<120x84xf32, #tpu.memory_space<vmem>>, %arg4: memref<1x84xf32, #tpu.memory_space<vmem>>, %arg5: memref<84x320xf32, #tpu.memory_space<vmem>>, %arg6: memref<1x320xf32, #tpu.memory_space<vmem>>, %arg7: memref<320x10xf32, #tpu.memory_space<vmem>>, %arg8: memref<2x10xf32, #tpu.memory_space<vmem>>, %arg9: memref<2x10xf32, #tpu.memory_space<vmem>>) attributes {dimension_semantics = [], scalar_prefetch = 0 : i64, scratch_operands = 0 : i64, tpu.core_type = #tpu.core_type<tc>} {
    %c0 = arith.constant 0 : index
    %c0_0 = arith.constant 0 : index
    %0 = vector.load %arg0[%c0, %c0_0] : memref<2x256xf32, #tpu.memory_space<vmem>>, vector<2x256xf32>
    %c0_1 = arith.constant 0 : index
    %c0_2 = arith.constant 0 : index
    %1 = vector.load %arg1[%c0_1, %c0_2] : memref<256x120xf32, #tpu.memory_space<vmem>>, vector<256x120xf32>
    %cst = arith.constant dense<0.000000e+00> : vector<2x120xf32>
    %2 = tpu.matmul %0, %1, %cst {dimension_numbers = #tpu.dot_dimension_numbers<[1], [0], [0], [1], [0, 0, 1, 1], [], []>} : vector<2x256xf32>, vector<256x120xf32>, vector<2x120xf32> -> vector<2x120xf32>
    %c0_3 = arith.constant 0 : index
    %c0_4 = arith.constant 0 : index
    %3 = vector.load %arg2[%c0_3, %c0_4] : memref<1x120xf32, #tpu.memory_space<vmem>>, vector<1x120xf32>
    %4 = vector.broadcast %3 : vector<1x120xf32> to vector<2x120xf32>
    %5 = arith.addf %2, %4 : vector<2x120xf32>
    %cst_5 = arith.constant 0.000000e+00 : f32
    %6 = vector.broadcast %cst_5 : f32 to vector<2x120xf32>
    %7 = arith.maximumf %5, %6 : vector<2x120xf32>
    %c0_6 = arith.constant 0 : index
    %c0_7 = arith.constant 0 : index
    %8 = vector.load %arg3[%c0_6, %c0_7] : memref<120x84xf32, #tpu.memory_space<vmem>>, vector<120x84xf32>
    %cst_8 = arith.constant dense<0.000000e+00> : vector<2x84xf32>
    %9 = tpu.matmul %7, %8, %cst_8 {dimension_numbers = #tpu.dot_dimension_numbers<[1], [0], [0], [1], [0, 0, 1, 1], [], []>} : vector<2x120xf32>, vector<120x84xf32>, vector<2x84xf32> -> vector<2x84xf32>
    %c0_9 = arith.constant 0 : index
    %c0_10 = arith.constant 0 : index
    %10 = vector.load %arg4[%c0_9, %c0_10] : memref<1x84xf32, #tpu.memory_space<vmem>>, vector<1x84xf32>
    %11 = vector.broadcast %10 : vector<1x84xf32> to vector<2x84xf32>
    %12 = arith.addf %9, %11 : vector<2x84xf32>
    %cst_11 = arith.constant 0.000000e+00 : f32
    %13 = vector.broadcast %cst_11 : f32 to vector<2x84xf32>
    %14 = arith.maximumf %12, %13 : vector<2x84xf32>
    %c0_12 = arith.constant 0 : index
    %c0_13 = arith.constant 0 : index
    %15 = vector.load %arg5[%c0_12, %c0_13] : memref<84x320xf32, #tpu.memory_space<vmem>>, vector<84x320xf32>
    %cst_14 = arith.constant dense<0.000000e+00> : vector<2x320xf32>
    %16 = tpu.matmul %14, %15, %cst_14 {dimension_numbers = #tpu.dot_dimension_numbers<[1], [0], [0], [1], [0, 0, 1, 1], [], []>} : vector<2x84xf32>, vector<84x320xf32>, vector<2x320xf32> -> vector<2x320xf32>
    %c0_15 = arith.constant 0 : index
    %c0_16 = arith.constant 0 : index
    %17 = vector.load %arg6[%c0_15, %c0_16] : memref<1x320xf32, #tpu.memory_space<vmem>>, vector<1x320xf32>
    %18 = vector.broadcast %17 : vector<1x320xf32> to vector<2x320xf32>
    %19 = arith.subf %16, %18 : vector<2x320xf32>
    %20 = arith.mulf %19, %19 : vector<2x320xf32>
    %c0_17 = arith.constant 0 : index
    %c0_18 = arith.constant 0 : index
    %21 = vector.load %arg7[%c0_17, %c0_18] : memref<320x10xf32, #tpu.memory_space<vmem>>, vector<320x10xf32>
    %cst_19 = arith.constant dense<0.000000e+00> : vector<2x10xf32>
    %22 = tpu.matmul %20, %21, %cst_19 {dimension_numbers = #tpu.dot_dimension_numbers<[1], [0], [0], [1], [0, 0, 1, 1], [], []>} : vector<2x320xf32>, vector<320x10xf32>, vector<2x10xf32> -> vector<2x10xf32>
    %c0_20 = arith.constant 0 : index
    %c0_21 = arith.constant 0 : index
    %23 = vector.load %arg8[%c0_20, %c0_21] : memref<2x10xf32, #tpu.memory_space<vmem>>, vector<2x10xf32>
    tpu.vector_store %arg8[%c0_20, %c0_21], %22 {strides = array<i32>} : memref<2x10xf32, #tpu.memory_space<vmem>>, vector<2x10xf32>,
    %cst_22 = arith.constant 0.000000e+00 : f32
    %24 = vector.broadcast %cst_22 : f32 to vector<2x10xf32>
    %25 = arith.subf %24, %22 : vector<2x10xf32>
    %26 = math.exp %25 : vector<2x10xf32>
    %c0_23 = arith.constant 0 : index
    %c0_24 = arith.constant 0 : index
    %27 = vector.load %arg9[%c0_23, %c0_24] : memref<2x10xf32, #tpu.memory_space<vmem>>, vector<2x10xf32>
    tpu.vector_store %arg9[%c0_23, %c0_24], %26 {strides = array<i32>} : memref<2x10xf32, #tpu.memory_space<vmem>>, vector<2x10xf32>,
    return
  }
}

</mosaic_0001>

<bundles_post_ra>
// kernel: cnn_duq_forward.3
= control target key start
LH: loop header
LB: loop body
LE: loop exit
PB: predicated region body
PF: predicated region fallthrough
CT: control target
= control target key end

     0   :  { %v462_v3 = vmov 0.0   ;;  %v463_v6 = vmov 0   ;;  %vm57_vm0 = vcmask 261120   ;;  %vm464_vm1 = vmmov 0   ;;  %s647_s0 = inlined_call_operand.vmem [shape: f32[32,1152], index: 0, kind: input, shape index: {}]   ;;  %s648_s1 = inlined_call_operand.vmem [shape: f32[6,32], index: 1, kind: input, shape index: {}]   ;;  %s649_s2 = inlined_call_operand.vmem [shape: f32[6,1], index: 2, kind: input, shape index: {}]   ;;  %s650_s3 = inlined_call_operand.vmem [shape: f32[6,1152], index: 3, kind: output, shape index: {}]  }
   0x1   :  { %v43_v0 = vld [vmem:[%s647_s0 + $0xe0] sm:$0xff]  ;;  %v42_v1 = vld [vmem:[%s647_s0 + $0xd8] sm:$0xff]  ;;  %125 = vmatprep.mubr.f32.mxu0 %v462_v3  ;;  %196 = vmatprep.mubr.f32.mxu1 %v462_v3  ;;  %v33_v4 = vld [vmem:[%s647_s0 + $0x90] sm:$0xff] }
   0x2   :  { %v34_v2 = vld [vmem:[%s647_s0 + $0x98] sm:$0xff]  ;;  %85 = vmatprep.subr.mxu0 %v43_v0  ;;  %v45_v5 = vld [vmem:[%s647_s0 + $0xf0] sm:$0xff]  ;;  %461 = vset.pattern.permute.xlu0 %v463_v6  ;;  %v44_v8 = vld [vmem:[%s647_s0 + $0xe8] sm:$0xff] }
   0x3   :  { %86 = vmatpush1.msra.mxu0 %v42_v1  ;;  %v25_v7 = vld [vmem:[%s647_s0 + $0x50] sm:$0xff]  ;;  %156 = vmatprep.subr.mxu1 %v45_v5  ;;  %v24_v9 = vld [vmem:[%s647_s0 + $0x48] sm:$0xff]  ;;  %v35_v11 = vld [vmem:[%s647_s0 + $0xa0] sm:$0xff] }
   0x4   :  { %87 = vmatprep.subr.mxu0 %v34_v2  ;;  %157 = vmatpush1.msra.mxu1 %v44_v8  ;;  %v36_v10 = vld [vmem:[%s647_s0 + $0xa8] sm:$0xff]  ;;  %v27_v13 = vld [vmem:[%s647_s0 + $0x60] sm:$0xff]  ;;  %v26_v15 = vld [vmem:[%s647_s0 + $0x58] sm:$0xff] }
   0x5   :  { %88 = vmatpush1.msra.mxu0 %v33_v4  ;;  %v16_v12 = vld [vmem:[%s647_s0 + $0x8] sm:$0xff]  ;;  %158 = vmatprep.subr.mxu1 %v36_v10  ;;  %v15_v14 = vld [vmem:[%s647_s0] sm:$0xff]  ;;  %v18_v16 = vld [vmem:[%s647_s0 + $0x18] sm:$0xff] }
   0x6   :  { %89 = vmatprep.subr.mxu0 %v25_v7  ;;  %159 = vmatpush1.msra.mxu1 %v35_v11  ;;  %v535_v17 = vld [vmem:[%s648_s1] sm:$0x3f]  ;;  %v46_v19 = vld [vmem:[%s647_s0 + $0xf8] sm:$0xff]  ;;  %v17_v20 = vld [vmem:[%s647_s0 + $0x10] sm:$0xff] }
   0x7   :  { %90 = vmatpush1.msra.mxu0 %v24_v9  ;;  %160 = vmatprep.subr.mxu1 %v27_v13  ;;  %v47_v18 = vld [vmem:[%s647_s0 + $0x100] sm:$0xff]  ;;  %v38_v21 = vld [vmem:[%s647_s0 + $0xb8] sm:$0xff]  ;;  %v49_v22 = vld [vmem:[%s647_s0 + $0x110] sm:$0xff] }
   0x8   :  { %91 = vmatprep.subr.mxu0 %v16_v12  ;;  %161 = vmatpush1.msra.mxu1 %v26_v15  ;;  %v37_v23 = vld [vmem:[%s647_s0 + $0xb0] sm:$0xff]  ;;  %v48_v25 = vld [vmem:[%s647_s0 + $0x108] sm:$0xff]  ;;  %v19_v29 = vld [vmem:[%s647_s0 + $0x20] sm:$0xff] }
   0x9   :  { %92 = vmatpush1.msra.mxu0 %v15_v14  ;;  %162 = vmatprep.subr.mxu1 %v18_v16  ;;  %v29_v24 = vld [vmem:[%s647_s0 + $0x70] sm:$0xff]  ;;  %v28_v26 = vld [vmem:[%s647_s0 + $0x68] sm:$0xff]  ;;  %v39_v30 = vld [vmem:[%s647_s0 + $0xc0] sm:$0xff] }
   0xa   :  { %437 = vmatmul.mubr.msk.f32.vlgmr.msra.gmra.mxu0 %vm57_vm0, %v535_v17  ;;  %227 = vmatprep.subr.mxu0 %v47_v18  ;;  %v40_v27 = vld [vmem:[%s647_s0 + $0xc8] sm:$0xff]  ;;  %v31_v31 = vld [vmem:[%s647_s0 + $0x80] sm:$0xff]  ;;  %v30_v32 = vld [vmem:[%s647_s0 + $0x78] sm:$0xff] }
   0xb   :  { %228 = vmatpush1.msra.mxu0 %v46_v19  ;;  %163 = vmatpush1.msra.mxu1 %v17_v20  ;;  %v20_v28 = vld [vmem:[%s647_s0 + $0x28] sm:$0xff]  ;;  %v50_v33 = vld [vmem:[%s647_s0 + $0x118] sm:$0xff]  ;;  %v21_v35 = vld [vmem:[%s647_s0 + $0x30] sm:$0xff] }
   0xc   :  { %229 = vmatprep.subr.mxu0 %v38_v21  ;;  %298 = vmatprep.subr.mxu1 %v49_v22  ;;  %v22_v34 = vld [vmem:[%s647_s0 + $0x38] sm:$0xff]  ;;  %v41_v36 = vld [vmem:[%s647_s0 + $0xd0] sm:$0xff]  ;;  %v32_v37 = vld [vmem:[%s647_s0 + $0x88] sm:$0xff] }
   0xd   :  { %230 = vmatpush1.msra.mxu0 %v37_v23  ;;  %438 = vmatmul.mubr.msk.f32.vlgmr.msra.gmra.mxu1 %vm57_vm0, %v535_v17  ;;  %v51_v38 = vld [vmem:[%s649_s2] sm:$0x3f] }
   0xe   :  { %231 = vmatprep.subr.mxu0 %v29_v24  ;;  %299 = vmatpush1.msra.mxu1 %v48_v25  ;;  %v23_v39 = vld [vmem:[%s647_s0 + $0x40] sm:$0xff] }
   0xf   :  { %232 = vmatpush1.msra.mxu0 %v28_v26  ;;  %300 = vmatprep.subr.mxu1 %v40_v27 }
  0x10   :  { %233 = vmatprep.subr.mxu0 %v20_v28  ;;  %267 = vmatprep.mubr.f32.mxu0 %v462_v3 }
  0x11   :  { %234 = vmatpush1.msra.mxu0 %v19_v29  ;;  %301 = vmatpush1.msra.mxu1 %v39_v30 }
  0x12   :  { %439 = vmatmul.mubr.msk.f32.vlgmr.msra.gmra.mxu0 %vm57_vm0, %v535_v17  ;;  %302 = vmatprep.subr.mxu1 %v31_v31 }
  0x13   :  { %447 = vmatprep.subr.mxu0 %v462_v3  ;;  %303 = vmatpush1.msra.mxu1 %v30_v32 }
  0x14   :  { %448 = vmatpush3.msra.mxu0 %v50_v33  ;;  %304 = vmatprep.subr.mxu1 %v22_v34 }
  0x15   :  { %449 = vmatprep.subr.mxu0 %v462_v3  ;;  %305 = vmatpush1.msra.mxu1 %v21_v35 }
  0x16   :  { %338 = vmatprep.mubr.f32.mxu1 %v462_v3  ;;  %450 = vmatpush3.msra.mxu0 %v41_v36 }
  0x17   :  { %440 = vmatmul.mubr.msk.f32.vlgmr.msra.gmra.mxu1 %vm57_vm0, %v535_v17  ;;  %451 = vmatprep.subr.mxu0 %v462_v3 }
  0x18   :  { %452 = vmatpush3.msra.mxu0 %v32_v37  ;;  %455 = vmatprep.mubr.msk.f32.mxu0 %vm464_vm1, %v462_v3 }
  0x19   :  { %453 = vmatprep.subr.mxu0 %v462_v3  ;;  %54 = vperm.xlu0 %461, %v51_v38  }
  0x1a   :  { %454 = vmatpush3.msra.mxu0 %v23_v39 }
  0x1b   :  { %456 = vmatmul.mubr.msk.f32.vlgmr.msra.gmra.mxu0 %vm57_vm0, %v535_v17 }
  0x94   :  { %v55_v40 = vpop.permute.xlu0 %54 }
  0xca   :  { %v127_v41 = vpop.f32.mrf.mxu0 }
  0xcb   :  { %v128_v42 = vadd.f32 %v127_v41, %v55_v40 }
  0xcc   :  { %v129_v43 = vpop.f32.mrf.mxu0 }
  0xcd   :  { %v415_v44 = vmax.f32 %v128_v42, 0.0  ;;  %v130_v45 = vadd.f32 %v129_v43, %v55_v40  ;;  %v198_v46 = vpop.f32.mrf.mxu1 }
  0xce   :  { %v199_v47 = vadd.f32 %v198_v46, %v55_v40 }
  0xcf   :  { %424 = vst [vmem:[%s650_s3] sm:$0x3f] %v415_v44  ;;  %v416_v48 = vmax.f32 %v130_v45, 0.0  ;;  %v200_v49 = vpop.f32.mrf.mxu1 }
  0xd0   :  { %v417_v50 = vmax.f32 %v199_v47, 0.0  ;;  %v201_v51 = vadd.f32 %v200_v49, %v55_v40 }
  0xd1   :  { %425 = vst [vmem:[%s650_s3 + $0x8] sm:$0x3f] %v416_v48 }
  0xd2   :  { %426 = vst [vmem:[%s650_s3 + $0x10] sm:$0x3f] %v417_v50  ;;  %v418_v52 = vmax.f32 %v201_v51, 0.0  ;;  %v269_v53 = vpop.f32.mrf.mxu0 }
  0xd3   :  { %v270_v54 = vadd.f32 %v269_v53, %v55_v40 }
  0xd4   :  { %427 = vst [vmem:[%s650_s3 + $0x18] sm:$0x3f] %v418_v52  ;;  %v271_v55 = vpop.f32.mrf.mxu0 }
  0xd5   :  { %v419_v56 = vmax.f32 %v270_v54, 0.0  ;;  %v272_v57 = vadd.f32 %v271_v55, %v55_v40 }
  0xd7   :  { %428 = vst [vmem:[%s650_s3 + $0x20] sm:$0x3f] %v419_v56  ;;  %v420_v58 = vmax.f32 %v272_v57, 0.0  ;;  %v340_v59 = vpop.f32.mrf.mxu1 }
  0xd8   :  { %v341_v60 = vadd.f32 %v340_v59, %v55_v40 }
  0xd9   :  { %429 = vst [vmem:[%s650_s3 + $0x28] sm:$0x3f] %v420_v58  ;;  %v342_v61 = vpop.f32.mrf.mxu1 }
  0xda   :  { %v421_v62 = vmax.f32 %v341_v60, 0.0  ;;  %v343_v63 = vadd.f32 %v342_v61, %v55_v40 }
  0xdb   :  { %v411_v0 = vpop.f32.mrf.mxu0 }
  0xdc   :  { %430 = vst [vmem:[%s650_s3 + $0x30] sm:$0x3f] %v421_v62  ;;  %v422_v1 = vmax.f32 %v343_v63, 0.0  ;;  %v412_v2 = vadd.f32 %v411_v0, %v55_v40 }
  0xdd   :  { %v457_v3 = vpop.f32.mrf.mxu0 }
  0xde   :  { %431 = vst [vmem:[%s650_s3 + $0x38] sm:$0x3f] %v422_v1  ;;  %v423_v4 = vmax.f32 %v412_v2, 0.0 }
  0xe0   :  { %432 = vst [vmem:[%s650_s3 + $0x40] sm:$0x3f] %v423_v4 }

// kernel: cnn_duq_forward.4
= control target key start
LH: loop header
LB: loop body
LE: loop exit
PB: predicated region body
PF: predicated region fallthrough
CT: control target
= control target key end

     0   :  { %v182_v0 = vmov 0.0   ;;  %vm49_vm0 = vcmask 195584   ;;  %v183_v25 = vmov 0   ;;  %s323_s0 = inlined_call_operand.vmem [shape: f32[152,128], index: 0, kind: input, shape index: {}]   ;;  %s324_s1 = inlined_call_operand.vmem [shape: f32[16,152], index: 1, kind: input, shape index: {}]   ;;  %s325_s2 = inlined_call_operand.vmem [shape: f32[16,1], index: 2, kind: input, shape index: {}]   ;;  %s326_s3 = inlined_call_operand.vmem [shape: f32[16,128], index: 3, kind: output, shape index: {}]  }
   0x1   :  { %56 = vmatprep.subr.mxu0 %v182_v0  ;;  %141 = vmatprep.subr.mxu1 %v182_v0  ;;  %v33_v1 = vld [vmem:[%s323_s0 + $0x78] sm:$0xff]  ;;  %v32_v2 = vld [vmem:[%s323_s0 + $0x70] sm:$0xff]  ;;  %v31_v3 = vld [vmem:[%s323_s0 + $0x68] sm:$0xff] }
   0x2   :  { %57 = vmatpush1.msra.mxu0 %v33_v1  ;;  %160 = vmatpush1.msra.mxu1 %v33_v1  ;;  %v30_v4 = vld [vmem:[%s323_s0 + $0x60] sm:$0xff]  ;;  %v29_v5 = vld [vmem:[%s323_s0 + $0x58] sm:$0xff]  ;;  %v28_v6 = vld [vmem:[%s323_s0 + $0x50] sm:$0xff] }
   0x3   :  { %58 = vmatprep.subr.mxu0 %v182_v0  ;;  %142 = vmatprep.subr.mxu1 %v182_v0  ;;  %v27_v7 = vld [vmem:[%s323_s0 + $0x48] sm:$0xff]  ;;  %v26_v8 = vld [vmem:[%s323_s0 + $0x40] sm:$0xff]  ;;  %v25_v9 = vld [vmem:[%s323_s0 + $0x38] sm:$0xff] }
   0x4   :  { %59 = vmatpush1.msra.mxu0 %v32_v2  ;;  %161 = vmatpush1.msra.mxu1 %v32_v2  ;;  %v24_v10 = vld [vmem:[%s323_s0 + $0x30] sm:$0xff]  ;;  %v23_v11 = vld [vmem:[%s323_s0 + $0x28] sm:$0xff]  ;;  %v22_v12 = vld [vmem:[%s323_s0 + $0x20] sm:$0xff] }
   0x5   :  { %60 = vmatprep.subr.mxu0 %v182_v0  ;;  %143 = vmatprep.subr.mxu1 %v182_v0  ;;  %v21_v13 = vld [vmem:[%s323_s0 + $0x18] sm:$0xff]  ;;  %v20_v14 = vld [vmem:[%s323_s0 + $0x10] sm:$0xff]  ;;  %v19_v15 = vld [vmem:[%s323_s0 + $0x8] sm:$0xff] }
   0x6   :  { %61 = vmatpush1.msra.mxu0 %v31_v3  ;;  %162 = vmatpush1.msra.mxu1 %v31_v3  ;;  %v18_v16 = vld [vmem:[%s323_s0] sm:$0xff]  ;;  %v36_v17 = vld [vmem:[%s323_s0 + $0x90] sm:$0xff]  ;;  %v35_v18 = vld [vmem:[%s323_s0 + $0x88] sm:$0xff] }
   0x7   :  { %62 = vmatprep.subr.mxu0 %v182_v0  ;;  %144 = vmatprep.subr.mxu1 %v182_v0  ;;  %v34_v19 = vld [vmem:[%s323_s0 + $0x80] sm:$0xff]  ;;  %v15_v20 = vld [vmem:[%s324_s1 + $0x8] sm:$0xff]  ;;  %v17_v21 = vld [vmem:[%s324_s1 + $0x18] sm:$0xff] }
   0x8   :  { %63 = vmatpush1.msra.mxu0 %v30_v4  ;;  %163 = vmatpush1.msra.mxu1 %v30_v4  ;;  %v14_v22 = vld [vmem:[%s324_s1] sm:$0xff]  ;;  %v16_v23 = vld [vmem:[%s324_s1 + $0x10] sm:$0xff]  ;;  %v38_v26 = vld [vmem:[%s325_s2 + $0x8] sm:$0xff] }
   0x9   :  { %64 = vmatprep.subr.mxu0 %v182_v0  ;;  %145 = vmatprep.subr.mxu1 %v182_v0  ;;  %v37_v24 = vld [vmem:[%s325_s2] sm:$0xff] }
   0xa   :  { %65 = vmatpush1.msra.mxu0 %v29_v5  ;;  %164 = vmatpush1.msra.mxu1 %v29_v5 }
   0xb   :  { %66 = vmatprep.subr.mxu0 %v182_v0  ;;  %146 = vmatprep.subr.mxu1 %v182_v0 }
   0xc   :  { %67 = vmatpush1.msra.mxu0 %v28_v6  ;;  %165 = vmatpush1.msra.mxu1 %v28_v6 }
   0xd   :  { %68 = vmatprep.subr.mxu0 %v182_v0  ;;  %147 = vmatprep.subr.mxu1 %v182_v0 }
   0xe   :  { %69 = vmatpush1.msra.mxu0 %v27_v7  ;;  %166 = vmatpush1.msra.mxu1 %v27_v7 }
   0xf   :  { %70 = vmatprep.subr.mxu0 %v182_v0  ;;  %148 = vmatprep.subr.mxu1 %v182_v0 }
  0x10   :  { %71 = vmatpush1.msra.mxu0 %v26_v8  ;;  %167 = vmatpush1.msra.mxu1 %v26_v8 }
  0x11   :  { %72 = vmatprep.subr.mxu0 %v182_v0  ;;  %149 = vmatprep.subr.mxu1 %v182_v0 }
  0x12   :  { %73 = vmatpush1.msra.mxu0 %v25_v9  ;;  %168 = vmatpush1.msra.mxu1 %v25_v9 }
  0x13   :  { %74 = vmatprep.subr.mxu0 %v182_v0  ;;  %150 = vmatprep.subr.mxu1 %v182_v0 }
  0x14   :  { %75 = vmatpush1.msra.mxu0 %v24_v10  ;;  %169 = vmatpush1.msra.mxu1 %v24_v10 }
  0x15   :  { %76 = vmatprep.subr.mxu0 %v182_v0  ;;  %151 = vmatprep.subr.mxu1 %v182_v0 }
  0x16   :  { %77 = vmatpush1.msra.mxu0 %v23_v11  ;;  %170 = vmatpush1.msra.mxu1 %v23_v11 }
  0x17   :  { %78 = vmatprep.subr.mxu0 %v182_v0  ;;  %152 = vmatprep.subr.mxu1 %v182_v0 }
  0x18   :  { %79 = vmatpush1.msra.mxu0 %v22_v12  ;;  %171 = vmatpush1.msra.mxu1 %v22_v12 }
  0x19   :  { %80 = vmatprep.subr.mxu0 %v182_v0  ;;  %153 = vmatprep.subr.mxu1 %v182_v0 }
  0x1a   :  { %81 = vmatpush1.msra.mxu0 %v21_v13  ;;  %172 = vmatpush1.msra.mxu1 %v21_v13 }
  0x1b   :  { %82 = vmatprep.subr.mxu0 %v182_v0  ;;  %154 = vmatprep.subr.mxu1 %v182_v0 }
  0x1c   :  { %83 = vmatpush1.msra.mxu0 %v20_v14  ;;  %173 = vmatpush1.msra.mxu1 %v20_v14 }
  0x1d   :  { %84 = vmatprep.subr.mxu0 %v182_v0  ;;  %155 = vmatprep.subr.mxu1 %v182_v0 }
  0x1e   :  { %85 = vmatpush1.msra.mxu0 %v19_v15  ;;  %174 = vmatpush1.msra.mxu1 %v19_v15 }
  0x1f   :  { %86 = vmatprep.subr.mxu0 %v182_v0  ;;  %156 = vmatprep.subr.mxu1 %v182_v0 }
  0x20   :  { %87 = vmatpush1.msra.mxu0 %v18_v16  ;;  %175 = vmatpush1.msra.mxu1 %v18_v16 }
  0x21   :  { %114 = vmatprep.subr.mxu0 %v182_v0  ;;  %157 = vmatprep.subr.mxu1 %v182_v0 }
  0x22   :  { %115 = vmatpush2.msra.mxu0 %v36_v17  ;;  %176 = vmatpush2.msra.mxu1 %v36_v17 }
  0x23   :  { %116 = vmatprep.subr.mxu0 %v182_v0  ;;  %158 = vmatprep.subr.mxu1 %v182_v0 }
  0x24   :  { %117 = vmatpush2.msra.mxu0 %v35_v18  ;;  %177 = vmatpush2.msra.mxu1 %v35_v18 }
  0x25   :  { %118 = vmatprep.subr.mxu0 %v182_v0  ;;  %159 = vmatprep.subr.mxu1 %v182_v0 }
  0x26   :  { %119 = vmatpush2.msra.mxu0 %v34_v19  ;;  %178 = vmatpush2.msra.mxu1 %v34_v19 }
  0x27   :  { %139 = vmatprep.mubr.msk.f32.mxu0 %vm49_vm0, %v15_v20  ;;  %140 = vmatprep.mubr.msk.f32.mxu1 %vm49_vm0, %v17_v21 }
  0x28   :  { %121 = vmatmul.mubr.f32.vlgmr.msra.gmra.mxu0 %v14_v22  ;;  %126 = vmatmul.mubr.f32.vlgmr.msra.gmra.mxu1 %v16_v23 }
  0x29   :  { %181 = vset.pattern.permute.xlu0 %v183_v25 }
  0x2a   :  { %41 = vperm.xlu0 %181, %v37_v24  }
  0x2e   :  { %46 = vperm.xlu0 %181, %v38_v26  }
  0xa5   :  { %v42_v27 = vpop.permute.xlu0 %41 }
  0xa9   :  { %v47_v28 = vpop.permute.xlu0 %46 }
  0xe8   :  { %v122_v29 = vpop.f32.mrf.mxu0  ;;  %v127_v30 = vpop.f32.mrf.mxu1 }
  0xe9   :  { %v123_v31 = vadd.f32 %v122_v29, %v42_v27  ;;  %v128_v32 = vadd.f32 %v127_v30, %v47_v28 }
  0xea   :  { %v124_v33 = vpop.f32.mrf.mxu0  ;;  %v129_v34 = vpop.f32.mrf.mxu1 }
  0xeb   :  { %v131_v35 = vmax.f32 %v123_v31, 0.0  ;;  %v132_v36 = vmax.f32 %v128_v32, 0.0 }
  0xed   :  { %133 = vst [vmem:[%s326_s3] sm:$0xff] %v131_v35  ;;  %134 = vst [vmem:[%s326_s3 + $0x8] sm:$0xff] %v132_v36 }

// kernel: cnn_duq_forward.5
= control target key start
LH: loop header
LB: loop body
LE: loop exit
PB: predicated region body
PF: predicated region fallthrough
CT: control target
= control target key end

     0   :  { %15 = vsyncpa [#allocation3], 0  ;;  %v925_v4 = vmov 0.0   ;;  %s1408_s0 = inlined_call_operand.vmem [shape: f32[2,256], index: 0, kind: input, shape index: {}]   ;;  %s1409_s1 = inlined_call_operand.vmem [shape: f32[256,120], index: 1, kind: input, shape index: {}]   ;;  %s1410_s2 = inlined_call_operand.vmem [shape: f32[1,120], index: 2, kind: input, shape index: {}]   ;;  %s1411_s3 = inlined_call_operand.vmem [shape: f32[120,84], index: 3, kind: input, shape index: {}]   ;;  %s1412_s4 = inlined_call_operand.vmem [shape: f32[1,84], index: 4, kind: input, shape index: {}]   ;;  %s1413_s5 = inlined_call_operand.vmem [shape: f32[84,320], index: 5, kind: input, shape index: {}]   ;;  %s1414_s6 = inlined_call_operand.vmem [shape: f32[1,320], index: 6, kind: input, shape index: {}]   ;;  %s1415_s7 = inlined_call_operand.vmem [shape: f32[320,10], index: 7, kind: input, shape index: {}]   ;;  %s1416_s8 = inlined_call_operand.hbm [shape: f32[2,10], index: 8, kind: output, shape index: {0}]   ;;  %s1417_s9 = inlined_call_operand.hbm [shape: f32[2,10], index: 9, kind: output, shape index: {1}]  }
   0x1   :  { %v65_v0 = vld [vmem:[%s1409_s1 + $0xf8] sm:$0xff]  ;;  %v64_v2 = vld [vmem:[%s1409_s1 + $0xf0] sm:$0xff]  ;;  %798 = vmatprep.subr.mxu1 %v925_v4  ;;  %v63_v5 = vld [vmem:[%s1409_s1 + $0xe8] sm:$0xff] }
   0x2   :  { %v49_v1 = vld [vmem:[%s1409_s1 + $0x78] sm:$0xff]  ;;  %691 = vmatprep.subr.mxu0 %v65_v0  ;;  %v48_v3 = vld [vmem:[%s1409_s1 + $0x70] sm:$0xff]  ;;  %v47_v6 = vld [vmem:[%s1409_s1 + $0x68] sm:$0xff] }
   0x3   :  { %692 = vmatpush3.msra.mxu0 %v49_v1  ;;  %v62_v7 = vld [vmem:[%s1409_s1 + $0xe0] sm:$0xff]  ;;  %v61_v9 = vld [vmem:[%s1409_s1 + $0xd8] sm:$0xff]  ;;  %v60_v11 = vld [vmem:[%s1409_s1 + $0xd0] sm:$0xff] }
   0x4   :  { %693 = vmatprep.subr.mxu0 %v64_v2  ;;  %v46_v8 = vld [vmem:[%s1409_s1 + $0x60] sm:$0xff]  ;;  %v45_v10 = vld [vmem:[%s1409_s1 + $0x58] sm:$0xff]  ;;  %v44_v12 = vld [vmem:[%s1409_s1 + $0x50] sm:$0xff] }
   0x5   :  { %694 = vmatpush3.msra.mxu0 %v48_v3  ;;  %v59_v13 = vld [vmem:[%s1409_s1 + $0xc8] sm:$0xff]  ;;  %v1022_v14 = vld.sshfl [vmem:[%s1408_s0] sm:$0x33 pattern:$0x76325410]  ;;  %v169_v17 = vld [vmem:[%s1411_s3 + $0x70] sm:$0xff] }
   0x6   :  { %695 = vmatprep.subr.mxu0 %v63_v5  ;;  %v43_v15 = vld [vmem:[%s1409_s1 + $0x48] sm:$0xff]  ;;  %v81_v16 = vcombine.high %v1022_v14, %v1022_v14  ;;  %v58_v18 = vld [vmem:[%s1409_s1 + $0xc0] sm:$0xff]  ;;  %799 = vmatpush3.msra.mxu1 %v169_v17  ;;  %v57_v21 = vld [vmem:[%s1409_s1 + $0xb8] sm:$0xff] }
   0x7   :  { %696 = vmatpush3.msra.mxu0 %v47_v6  ;;  %v168_v19 = vld [vmem:[%s1411_s3 + $0x68] sm:$0xff]  ;;  %v42_v20 = vld [vmem:[%s1409_s1 + $0x40] sm:$0xff]  ;;  %800 = vmatprep.subr.mxu1 %v925_v4 }
   0x8   :  { %697 = vmatprep.subr.mxu0 %v62_v7  ;;  %148 = vmatprep.mubr.f32.mxu0 %v81_v16  ;;  %v167_v22 = vld [vmem:[%s1411_s3 + $0x60] sm:$0xff] }
   0x9   :  { %698 = vmatpush3.msra.mxu0 %v46_v8 }
   0xa   :  { %699 = vmatprep.subr.mxu0 %v61_v9 }
   0xb   :  { %700 = vmatpush3.msra.mxu0 %v45_v10 }
   0xc   :  { %701 = vmatprep.subr.mxu0 %v60_v11 }
   0xd   :  { %702 = vmatpush3.msra.mxu0 %v44_v12 }
   0xe   :  { %703 = vmatprep.subr.mxu0 %v59_v13 }
   0xf   :  { %704 = vmatpush3.msra.mxu0 %v43_v15 }
  0x10   :  { %16 = vsyncpa [#allocation5], 0  ;;  %705 = vmatprep.subr.mxu0 %v58_v18  ;;  %v41_v23 = vld [vmem:[%s1409_s1 + $0x38] sm:$0xff]  ;;  %801 = vmatpush3.msra.mxu1 %v168_v19  ;;  %v56_v24 = vld [vmem:[%s1409_s1 + $0xb0] sm:$0xff]  ;;  %vm926_vm0 = vmmov 0   ;;  %vm289_vm1 = vcmask 1043456  }
  0x11   :  { %706 = vmatpush3.msra.mxu0 %v42_v20  ;;  %802 = vmatprep.subr.mxu1 %v925_v4  ;;  %v166_v25 = vld [vmem:[%s1411_s3 + $0x58] sm:$0xff]  ;;  %v40_v26 = vld [vmem:[%s1409_s1 + $0x30] sm:$0xff]  ;;  %v55_v27 = vld [vmem:[%s1409_s1 + $0xa8] sm:$0xff]  ;;  %vm177_vm2 = vcmask 982016   ;;  %vm285_vm3 = vcmask 687104   ;;  %vm503_vm4 = vcmask 523264  }
  0x12   :  { %707 = vmatprep.subr.mxu0 %v57_v21  ;;  %803 = vmatpush3.msra.mxu1 %v167_v22  ;;  %v165_v28 = vld [vmem:[%s1411_s3 + $0x50] sm:$0xff]  ;;  %v39_v29 = vld [vmem:[%s1409_s1 + $0x28] sm:$0xff]  ;;  %v54_v30 = vld [vmem:[%s1409_s1 + $0xa0] sm:$0xff]  ;;  %vm647_vm5 = vcmask 74752  }
  0x13   :  { %708 = vmatpush3.msra.mxu0 %v41_v23  ;;  %804 = vmatprep.subr.mxu1 %v925_v4  ;;  %v164_v31 = vld [vmem:[%s1411_s3 + $0x48] sm:$0xff]  ;;  %v38_v32 = vld [vmem:[%s1409_s1 + $0x20] sm:$0xff]  ;;  %v53_v33 = vld [vmem:[%s1409_s1 + $0x98] sm:$0xff] }
  0x14   :  { %709 = vmatprep.subr.mxu0 %v56_v24  ;;  %805 = vmatpush3.msra.mxu1 %v166_v25  ;;  %v163_v34 = vld [vmem:[%s1411_s3 + $0x40] sm:$0xff]  ;;  %v37_v35 = vld [vmem:[%s1409_s1 + $0x18] sm:$0xff]  ;;  %v52_v36 = vld [vmem:[%s1409_s1 + $0x90] sm:$0xff] }
  0x15   :  { %710 = vmatpush3.msra.mxu0 %v40_v26  ;;  %806 = vmatprep.subr.mxu1 %v925_v4  ;;  %v162_v37 = vld [vmem:[%s1411_s3 + $0x38] sm:$0xff]  ;;  %v36_v38 = vld [vmem:[%s1409_s1 + $0x10] sm:$0xff]  ;;  %v51_v39 = vld [vmem:[%s1409_s1 + $0x88] sm:$0xff] }
  0x16   :  { %711 = vmatprep.subr.mxu0 %v55_v27  ;;  %807 = vmatpush3.msra.mxu1 %v165_v28  ;;  %v161_v40 = vld [vmem:[%s1411_s3 + $0x30] sm:$0xff]  ;;  %v35_v41 = vld [vmem:[%s1409_s1 + $0x8] sm:$0xff]  ;;  %v50_v42 = vld [vmem:[%s1409_s1 + $0x80] sm:$0xff] }
  0x17   :  { %712 = vmatpush3.msra.mxu0 %v39_v29  ;;  %808 = vmatprep.subr.mxu1 %v925_v4  ;;  %v160_v43 = vld [vmem:[%s1411_s3 + $0x28] sm:$0xff]  ;;  %v34_v44 = vld [vmem:[%s1409_s1] sm:$0xff]  ;;  %v158_v46 = vld [vmem:[%s1411_s3 + $0x18] sm:$0xff] }
  0x18   :  { %713 = vmatprep.subr.mxu0 %v54_v30  ;;  %809 = vmatpush3.msra.mxu1 %v164_v31  ;;  %v159_v45 = vld [vmem:[%s1411_s3 + $0x20] sm:$0xff]  ;;  %v157_v47 = vld [vmem:[%s1411_s3 + $0x10] sm:$0xff]  ;;  %v156_v48 = vld [vmem:[%s1411_s3 + $0x8] sm:$0xff] }
  0x19   :  { %714 = vmatpush3.msra.mxu0 %v38_v32  ;;  %810 = vmatprep.subr.mxu1 %v925_v4  ;;  %v155_v49 = vld [vmem:[%s1411_s3] sm:$0xff]  ;;  %v283_v50 = vld [vmem:[%s1413_s5 + $0xf8] sm:$0xf]  ;;  %v281_v52 = vld [vmem:[%s1413_s5 + $0xe8] sm:$0xff] }
  0x1a   :  { %715 = vmatprep.subr.mxu0 %v53_v33  ;;  %811 = vmatpush3.msra.mxu1 %v163_v34  ;;  %v284_v51 = vld [vmem:[%s1413_s5 + $0x100] sm:$0xf]  ;;  %v278_v53 = vld [vmem:[%s1413_s5 + $0xd0] sm:$0xff]  ;;  %v275_v54 = vld [vmem:[%s1413_s5 + $0xb8] sm:$0xff] }
  0x1b   :  { %716 = vmatpush3.msra.mxu0 %v37_v35  ;;  %812 = vmatprep.subr.mxu1 %v925_v4  ;;  %v272_v55 = vld [vmem:[%s1413_s5 + $0xa0] sm:$0xff]  ;;  %v269_v56 = vld [vmem:[%s1413_s5 + $0x88] sm:$0xff]  ;;  %v266_v57 = vld [vmem:[%s1413_s5 + $0x70] sm:$0xff] }
  0x1c   :  { %717 = vmatprep.subr.mxu0 %v52_v36  ;;  %813 = vmatpush3.msra.mxu1 %v162_v37  ;;  %v263_v58 = vld [vmem:[%s1413_s5 + $0x58] sm:$0xff]  ;;  %v681_v60 = vld [vmem:[%s1410_s2] ss:$0 sm:$0xff]  ;;  %v282_v1 = vld [vmem:[%s1413_s5 + $0xf0] sm:$0xf] }
  0x1d   :  { %718 = vmatpush3.msra.mxu0 %v36_v38  ;;  %814 = vmatprep.subr.mxu1 %v925_v4  ;;  %v280_v2 = vld [vmem:[%s1413_s5 + $0xe0] sm:$0xff]  ;;  %v279_v3 = vld [vmem:[%s1413_s5 + $0xd8] sm:$0xff]  ;;  %v277_v5 = vld [vmem:[%s1413_s5 + $0xc8] sm:$0xff] }
  0x1e   :  { %719 = vmatprep.subr.mxu0 %v51_v39  ;;  %815 = vmatpush3.msra.mxu1 %v161_v40  ;;  %v276_v6 = vld [vmem:[%s1413_s5 + $0xc0] sm:$0xff]  ;;  %v274_v7 = vld [vmem:[%s1413_s5 + $0xb0] sm:$0xff]  ;;  %v273_v8 = vld [vmem:[%s1413_s5 + $0xa8] sm:$0xff] }
  0x1f   :  { %720 = vmatpush3.msra.mxu0 %v35_v41  ;;  %816 = vmatprep.subr.mxu1 %v925_v4  ;;  %v271_v9 = vld [vmem:[%s1413_s5 + $0x98] sm:$0xff]  ;;  %v270_v10 = vld [vmem:[%s1413_s5 + $0x90] sm:$0xff]  ;;  %v268_v11 = vld [vmem:[%s1413_s5 + $0x80] sm:$0xff] }
  0x20   :  { %721 = vmatprep.subr.mxu0 %v50_v42  ;;  %817 = vmatpush3.msra.mxu1 %v160_v43  ;;  %v267_v12 = vld [vmem:[%s1413_s5 + $0x78] sm:$0xff]  ;;  %v265_v13 = vld [vmem:[%s1413_s5 + $0x68] sm:$0xff]  ;;  %v262_v15 = vld [vmem:[%s1413_s5 + $0x50] sm:$0xff] }
  0x21   :  { %722 = vmatpush3.msra.mxu0 %v34_v44  ;;  %818 = vmatprep.subr.mxu1 %v925_v4  ;;  %v261_v16 = vld [vmem:[%s1413_s5 + $0x48] sm:$0xff]  ;;  %v259_v17 = vld [vmem:[%s1413_s5 + $0x38] sm:$0xff]  ;;  %v258_v18 = vld [vmem:[%s1413_s5 + $0x30] sm:$0xff] }
  0x22   :  { %149 = vmatmul.mubr.f32.vlgmr.msra.gmra.mxu0 %v1022_v14  ;;  %831 = vmatprep.subr.mxu0 %v925_v4  ;;  %v264_v14 = vld [vmem:[%s1413_s5 + $0x60] sm:$0xff]  ;;  %v255_v21 = vld [vmem:[%s1413_s5 + $0x18] sm:$0xff]  ;;  %v257_v22 = vld [vmem:[%s1413_s5 + $0x28] sm:$0xff] }
  0x23   :  { %819 = vmatpush3.msra.mxu1 %v159_v45  ;;  %828 = vmatprep.mubr.msk.f32.mxu1 %vm926_vm0, %v925_v4  ;;  %v260_v19 = vld [vmem:[%s1413_s5 + $0x40] sm:$0xff]  ;;  %v253_v23 = vld [vmem:[%s1413_s5 + $0x8] sm:$0xff]  ;;  %v254_v25 = vld [vmem:[%s1413_s5 + $0x10] sm:$0xff] }
  0x24   :  { %820 = vmatprep.subr.mxu1 %v925_v4  ;;  %853 = vmatprep.mubr.msk.f32.mxu0 %vm926_vm0, %v925_v4  ;;  %v256_v20 = vld [vmem:[%s1413_s5 + $0x20] sm:$0xff]  ;;  %v494_v26 = vld [vmem:[%s1415_s7 + $0xf8] sm:$0xff]  ;;  %v493_v34 = vld [vmem:[%s1415_s7 + $0xf0] sm:$0xff] }
  0x25   :  { %821 = vmatpush3.msra.mxu1 %v158_v46  ;;  %832 = vmatpush3.msk.msra.mxu0 %vm289_vm1, %v284_v51  ;;  %v252_v24 = vld [vmem:[%s1413_s5] sm:$0xff]  ;;  %v478_v32 = vld [vmem:[%s1415_s7 + $0x78] sm:$0xff]  ;;  %v477_v35 = vld [vmem:[%s1415_s7 + $0x70] sm:$0xff] }
  0x26   :  { %822 = vmatprep.subr.mxu1 %v925_v4  ;;  %833 = vmatprep.subr.mxu0 %v925_v4  ;;  %v683_v27 = vld [vmem:[%s1412_s4] ss:$0 sm:$0xff]  ;;  %v502_v33 = vld [vmem:[%s1415_s7 + $0x138] sm:$0xff]  ;;  %v501_v36 = vld [vmem:[%s1415_s7 + $0x130] sm:$0xff] }
  0x27   :  { %823 = vmatpush3.msra.mxu1 %v157_v47  ;;  %834 = vmatpush3.msra.mxu0 %v281_v52  ;;  %v492_v37 = vld [vmem:[%s1415_s7 + $0xe8] sm:$0xff]  ;;  %v491_v40 = vld [vmem:[%s1415_s7 + $0xe0] sm:$0xff]  ;;  %v490_v43 = vld [vmem:[%s1415_s7 + $0xd8] sm:$0xff] }
  0x28   :  { %824 = vmatprep.subr.mxu1 %v925_v4  ;;  %835 = vmatprep.subr.mxu0 %v925_v4  ;;  %v476_v38 = vld [vmem:[%s1415_s7 + $0x68] sm:$0xff]  ;;  %v475_v41 = vld [vmem:[%s1415_s7 + $0x60] sm:$0xff]  ;;  %v474_v44 = vld [vmem:[%s1415_s7 + $0x58] sm:$0xff] }
  0x29   :  { %825 = vmatpush3.msra.mxu1 %v156_v48  ;;  %836 = vmatpush3.msra.mxu0 %v278_v53  ;;  %v500_v39 = vld [vmem:[%s1415_s7 + $0x128] sm:$0xff]  ;;  %v499_v42 = vld [vmem:[%s1415_s7 + $0x120] sm:$0xff]  ;;  %v498_v45 = vld [vmem:[%s1415_s7 + $0x118] sm:$0xff] }
  0x2a   :  { %826 = vmatprep.subr.mxu1 %v925_v4  ;;  %837 = vmatprep.subr.mxu0 %v925_v4  ;;  %v489_v46 = vld [vmem:[%s1415_s7 + $0xd0] sm:$0xff]  ;;  %v488_v48 = vld [vmem:[%s1415_s7 + $0xc8] sm:$0xff]  ;;  %v471_v51 = vld [vmem:[%s1415_s7 + $0x40] sm:$0xff] }
  0x2b   :  { %827 = vmatpush3.msra.mxu1 %v155_v49  ;;  %838 = vmatpush3.msra.mxu0 %v275_v54  ;;  %v473_v47 = vld [vmem:[%s1415_s7 + $0x50] sm:$0xff]  ;;  %v472_v49 = vld [vmem:[%s1415_s7 + $0x48] sm:$0xff]  ;;  %v486_v52 = vld [vmem:[%s1415_s7 + $0xb8] sm:$0xff] }
  0x2c   :  { %685 = vmatprep.subr.msk.mxu1 %vm289_vm1, %v283_v50  ;;  %839 = vmatprep.subr.mxu0 %v925_v4  ;;  %v487_v50 = vld [vmem:[%s1415_s7 + $0xc0] sm:$0xff]  ;;  %v470_v53 = vld [vmem:[%s1415_s7 + $0x38] sm:$0xff]  ;;  %v485_v54 = vld [vmem:[%s1415_s7 + $0xb0] sm:$0xff] }
  0x2d   :  { %840 = vmatpush3.msra.mxu0 %v272_v55  ;;  %v469_v55 = vld [vmem:[%s1415_s7 + $0x30] sm:$0xff] }
  0x2e   :  { %841 = vmatprep.subr.mxu0 %v925_v4 }
  0x2f   :  { %842 = vmatpush3.msra.mxu0 %v269_v56  ;;  %v484_v56 = vld [vmem:[%s1415_s7 + $0xa8] sm:$0xff] }
  0x30   :  { %843 = vmatprep.subr.mxu0 %v925_v4 }
  0x31   :  { %844 = vmatpush3.msra.mxu0 %v266_v57  ;;  %v468_v57 = vld [vmem:[%s1415_s7 + $0x28] sm:$0xff] }
  0x32   :  { %845 = vmatprep.subr.mxu0 %v925_v4 }
  0x33   :  { %846 = vmatpush3.msra.mxu0 %v263_v58  ;;  %v483_v58 = vld [vmem:[%s1415_s7 + $0xa0] sm:$0xff] }
  0x34   :  { %847 = vmatprep.subr.mxu0 %v925_v4 }
  0x35   :  { %848 = vmatpush3.msra.mxu0 %v260_v19 }
  0x36   :  { %849 = vmatprep.subr.mxu0 %v925_v4 }
  0x37   :  { %850 = vmatpush3.msra.mxu0 %v257_v22 }
  0x38   :  { %851 = vmatprep.subr.mxu0 %v925_v4 }
  0x39   :  { %852 = vmatpush3.msra.mxu0 %v254_v25 }
  0x3a   :  { %856 = vmatprep.subr.mxu0 %v925_v4 }
  0xe2   :  { %v723_v59 = vpop.f32.mrf.mxu0 }
  0xe4   :  { %v724_v61 = vpop.f32.mrf.mxu0 }
  0xe5   :  { %v725_v62 = vadd.f32 %v724_v61, %v723_v59  ;;  %v467_v59 = vld [vmem:[%s1415_s7 + $0x20] sm:$0xff]  ;;  %v497_v61 = vld [vmem:[%s1415_s7 + $0x110] sm:$0xff] }
  0xe7   :  { %v151_v63 = vadd.f32 %v725_v62, %v681_v60  ;;  %v482_v60 = vld [vmem:[%s1415_s7 + $0x98] sm:$0xff] }
  0xe8   :  { %v466_v62 = vld [vmem:[%s1415_s7 + $0x18] sm:$0xff] }
  0xe9   :  { %v154_v0 = vmax.f32 %v151_v63, 0.0  ;;  %v481_v63 = vld [vmem:[%s1415_s7 + $0x90] sm:$0xff] }
  0xeb   :  { %829 = vmatmul.mubr.msk.f32.vlgmr.msra.gmra.mxu1 %vm177_vm2, %v154_v0  ;;  %v496_v0 = vld [vmem:[%s1415_s7 + $0x108] sm:$0xff] }
  0xec   :  { %686 = vmatpush1.msk.msra.mxu1 %vm289_vm1, %v282_v1  ;;  %363 = vmatprep.mubr.f32.mxu1 %v925_v4  ;;  %v465_v1 = vld [vmem:[%s1415_s7 + $0x10] sm:$0xff] }
  0xed   :  { %311 = vmatprep.subr.mxu1 %v280_v2  ;;  %v480_v2 = vld [vmem:[%s1415_s7 + $0x88] sm:$0xff] }
  0xee   :  { %312 = vmatpush1.msra.mxu1 %v279_v3  ;;  %v495_v3 = vld [vmem:[%s1415_s7 + $0x100] sm:$0xff] }
  0xef   :  { %313 = vmatprep.subr.mxu1 %v277_v5  ;;  %v464_v5 = vld [vmem:[%s1415_s7 + $0x8] sm:$0xff] }
  0xf0   :  { %314 = vmatpush1.msra.mxu1 %v276_v6  ;;  %v479_v6 = vld [vmem:[%s1415_s7 + $0x80] sm:$0xff] }
  0xf1   :  { %315 = vmatprep.subr.mxu1 %v274_v7  ;;  %v442_v7 = vlaneseq }
  0xf2   :  { %316 = vmatpush1.msra.mxu1 %v273_v8 }
  0xf3   :  { %317 = vmatprep.subr.mxu1 %v271_v9  ;;  %v443_v8 = vshrl.u32 %v442_v7, 7 }
  0xf4   :  { %318 = vmatpush1.msra.mxu1 %v270_v10  ;;  %v440_v10 = vld [vmem:[%s1414_s6] sm:$0x7]  ;;  %s927_s6 = smov [#allocation2]  }
  0xf5   :  { %319 = vmatprep.subr.mxu1 %v268_v11  ;;  %v452_v9 = vsub.s32 2, %v443_v8  ;;  %v444_v11 = vsub.s32 0, %v443_v8 }
  0xf6   :  { %320 = vmatpush1.msra.mxu1 %v267_v12  ;;  %v448_v12 = vsub.s32 1, %v443_v8 }
  0xf7   :  { %321 = vmatprep.subr.mxu1 %v265_v13  ;;  %v453_v13 = vrot.slane %v440_v10, %v452_v9 }
  0xf8   :  { %322 = vmatpush1.msra.mxu1 %v264_v14  ;;  %v445_v14 = vrot.slane %v440_v10, %v444_v11 }
  0xf9   :  { %323 = vmatprep.subr.mxu1 %v262_v15  ;;  %v449_v15 = vrot.slane %v440_v10, %v448_v12 }
  0xfa   :  { %324 = vmatpush1.msra.mxu1 %v261_v16 }
  0xfb   :  { %325 = vmatprep.subr.mxu1 %v259_v17 }
  0xfc   :  { %326 = vmatpush1.msra.mxu1 %v258_v18 }
  0xfd   :  { %327 = vmatprep.subr.mxu1 %v256_v20 }
  0xfe   :  { %328 = vmatpush1.msra.mxu1 %v255_v21 }
  0xff   :  { %329 = vmatprep.subr.mxu1 %v253_v23 }
 0x100   :  { %330 = vmatpush1.msra.mxu1 %v252_v24 }
 0x101   :  { %754 = vmatprep.subr.mxu1 %v494_v26 }
 0x1ab   :  { %v247_v28 = vpop.f32.mrf.mxu1 }
 0x1ac   :  { %v248_v29 = vadd.f32 %v683_v27, %v247_v28 }
 0x1ad   :  { %v830_v30 = vpop.f32.mrf.mxu1 }
 0x1ae   :  { %v251_v31 = vmax.f32 %v248_v29, 0.0 }
 0x1b0   :  { %687 = vmatmul.mubr.msk.f32.vlgmr.msra.gmra.mxu1 %vm285_vm3, %v251_v31  ;;  %854 = vmatmul.mubr.msk.f32.vlgmr.msra.gmra.mxu0 %vm285_vm3, %v251_v31 }
 0x1b1   :  { %755 = vmatpush3.msra.mxu1 %v478_v32  ;;  %857 = vmatpush3.msra.mxu0 %v502_v33 }
 0x1b2   :  { %756 = vmatprep.subr.mxu1 %v493_v34  ;;  %858 = vmatprep.subr.mxu0 %v925_v4 }
 0x1b3   :  { %757 = vmatpush3.msra.mxu1 %v477_v35  ;;  %859 = vmatpush3.msra.mxu0 %v501_v36 }
 0x1b4   :  { %758 = vmatprep.subr.mxu1 %v492_v37  ;;  %860 = vmatprep.subr.mxu0 %v925_v4 }
 0x1b5   :  { %759 = vmatpush3.msra.mxu1 %v476_v38  ;;  %861 = vmatpush3.msra.mxu0 %v500_v39 }
 0x1b6   :  { %760 = vmatprep.subr.mxu1 %v491_v40  ;;  %862 = vmatprep.subr.mxu0 %v925_v4 }
 0x1b7   :  { %761 = vmatpush3.msra.mxu1 %v475_v41  ;;  %863 = vmatpush3.msra.mxu0 %v499_v42 }
 0x1b8   :  { %762 = vmatprep.subr.mxu1 %v490_v43  ;;  %864 = vmatprep.subr.mxu0 %v925_v4 }
 0x1b9   :  { %763 = vmatpush3.msra.mxu1 %v474_v44  ;;  %865 = vmatpush3.msra.mxu0 %v498_v45 }
 0x1ba   :  { %764 = vmatprep.subr.mxu1 %v489_v46  ;;  %866 = vmatprep.subr.mxu0 %v925_v4 }
 0x1bb   :  { %765 = vmatpush3.msra.mxu1 %v473_v47  ;;  %872 = vmatprep.mubr.msk.f32.mxu0 %vm926_vm0, %v925_v4 }
 0x1bc   :  { %766 = vmatprep.subr.mxu1 %v488_v48  ;;  %867 = vmatpush3.msra.mxu0 %v497_v61 }
 0x1bd   :  { %767 = vmatpush3.msra.mxu1 %v472_v49  ;;  %868 = vmatprep.subr.mxu0 %v925_v4 }
 0x1be   :  { %768 = vmatprep.subr.mxu1 %v487_v50  ;;  %869 = vmatpush3.msra.mxu0 %v496_v0 }
 0x1bf   :  { %769 = vmatpush3.msra.mxu1 %v471_v51  ;;  %870 = vmatprep.subr.mxu0 %v925_v4  ;;  %v463_v4 = vld [vmem:[%s1415_s7] sm:$0xff]  ;;  %s659_s7 = sshll.u32 %s927_s6, 4  ;;  %s660_s7 = int_to_ptr.vmem [resolvable:$true] %s659_s7 }
 0x1c0   :  { %770 = vmatprep.subr.mxu1 %v486_v52  ;;  %871 = vmatpush3.msra.mxu0 %v495_v3  ;;  %s881_s14 = scalar_lea.vmem %s660_s7, 32  ;;  %p886_p1 = scmp.lt.s32.totalorder %s660_s7, %s660_s7 }
 0x1c1   :  { %771 = vmatpush3.msra.mxu1 %v470_v53  ;;  %p882_p0 = scmp.ne.s32.totalorder %s660_s7, %s881_s14  ;;  %p887_p2 = scmp.lt.s32.totalorder %s881_s14, %s881_s14 }
 0x1c2   :  { %772 = vmatprep.subr.mxu1 %v485_v54 }
 0x1c3   :  { %773 = vmatpush3.msra.mxu1 %v469_v55  ;;  %p888_p3 = por %p887_p2, %p886_p1 }
 0x1c4   :  { %774 = vmatprep.subr.mxu1 %v484_v56 }
 0x1c5   :  { %775 = vmatpush3.msra.mxu1 %v468_v57  ;;  %p889_p4 = pnand %p888_p3, %p882_p0 }
 0x1c6   :  { %776 = vmatprep.subr.mxu1 %v483_v58 }
 0x1c7   :  { %777 = vmatpush3.msra.mxu1 %v467_v59 }
 0x1c8   :  { %778 = vmatprep.subr.mxu1 %v482_v60 }
 0x1c9   :  { %779 = vmatpush3.msra.mxu1 %v466_v62 }
 0x1ca   :  { %780 = vmatprep.subr.mxu1 %v481_v63 }
 0x1cb   :  { %781 = vmatpush3.msra.mxu1 %v465_v1 }
 0x1cc   :  { %782 = vmatprep.subr.mxu1 %v480_v2 }
 0x1cd   :  { %783 = vmatpush3.msra.mxu1 %v464_v5 }
 0x1ce   :  { %784 = vmatprep.subr.mxu1 %v479_v6 }
 0x1cf   :  { %785 = vmatpush3.msra.mxu1 %v463_v4 }
 0x270   :  { %v365_v16 = vpop.f32.mrf.mxu1  ;;  %v436_v17 = vpop.f32.mrf.mxu0 }
 0x271   :  { %v459_v18 = vsub.f32 %v436_v17, %v453_v13  ;;  %v457_v19 = vsub.f32 %v365_v16, %v445_v14 }
 0x272   :  { %v367_v20 = vpop.f32.mrf.mxu1  ;;  %v855_v21 = vpop.f32.mrf.mxu0 }
 0x273   :  { %v462_v22 = vmul.f32 %v459_v18, %v459_v18  ;;  %v458_v23 = vsub.f32 %v367_v20, %v449_v15  ;;  %v460_v25 = vmul.f32 %v457_v19, %v457_v19 }
 0x275   :  { %v461_v24 = vmul.f32 %v458_v23, %v458_v23  ;;  %873 = vmatmul.mubr.msk.f32.vlgmr.msra.gmra.mxu0 %vm503_vm4, %v462_v22 }
 0x277   :  { %571 = vmatprep.mubr.f32.mxu1 %v461_v24 }
 0x278   :  { %572 = vmatmul.mubr.f32.vlgmr.msra.gmra.mxu1 %v460_v25 }
 0x335   :  { %v643_v26 = vpop.f32.mrf.mxu0 }
 0x337   :  { %v874_v27 = vpop.f32.mrf.mxu0 }
 0x338   :  { %v786_v28 = vpop.f32.mrf.mxu1 }
 0x33a   :  { %v787_v29 = vpop.f32.mrf.mxu1 }
 0x33b   :  { %v788_v30 = vadd.f32 %v787_v29, %v786_v28 }
 0x33d   :  { %v644_v31 = vadd.f32 %v788_v30, %v643_v26 }
 0x33f   :  { %648 = vst.msk [vmem:[#allocation2] sm:$0x3] %vm647_vm5, %v644_v31  ;;  %v649_v32 = vsub.f32 0.0, %v644_v31 }
 0x340   :  { %892 = shalt.err (!%p889_p4)
}
 0x341   :  { %662 = dma.vmem_to_hbm [thread:$0]  %s660_s7, 32, %s1416_s8, [#allocation3]   ;;  %v650_v33 = vmul.f32 1.442695, %v649_v32 }
 0x342   :  { %s928_s16 = smov [#allocation4]  }
 0x343   :  { %879 = vpow2.f32 %v650_v33  ;;  %s669_s17 = sshll.u32 %s928_s16, 4  ;;  %s670_s17 = int_to_ptr.vmem [resolvable:$true] %s669_s17 }
 0x344   :  { %s901_s18 = scalar_lea.vmem %s670_s17, 32  ;;  %p906_p6 = scmp.lt.s32.totalorder %s670_s17, %s670_s17 }
 0x345   :  { %p902_p5 = scmp.ne.s32.totalorder %s670_s17, %s901_s18  ;;  %p907_p7 = scmp.lt.s32.totalorder %s901_s18, %s901_s18 }
 0x347   :  { %p908_p8 = por %p907_p7, %p906_p6 }
 0x349   :  { %p909_p9 = pnand %p908_p8, %p902_p5 }
 0x350   :  { %v880_v34 = vpop.eup %879 }
 0x351   :  { %652 = vst.msk [vmem:[#allocation4] sm:$0x3] %vm647_vm5, %v880_v34 }
 0x352   :  { %912 = shalt.err (!%p909_p9)
}
 0x353   :  { %672 = dma.vmem_to_hbm [thread:$0]  %s670_s17, 32, %s1417_s9, [#allocation5]  }
 0x354   :  { %921 = dma.done.wait [#allocation3], 32  }
 0x355   :  { %922 = vsyncadd [#allocation3], 4294967264 }
 0x356   :  { %923 = dma.done.wait [#allocation5], 32  }
 0x357   :  { %924 = vsyncadd [#allocation5], 4294967264 }
 0x358   :  { %679 = vsyncpa [#allocation3], 1 }
 0x359   :  { %680 = vsyncpa [#allocation5], 1 }

</bundles_post_ra>
